<compile_context>
chip_gen: v7x
topology: tpu7x:2x2x1
jax: 0.10.0
libtpu: 0.0.40
codegen_flags: <defaults>
</compile_context>

<pallas_src>
import functools

import jax
import jax.numpy as jnp
from jax.experimental import pallas as pl
from jax.experimental.pallas import tpu as pltpu

_SQRT_2_OVER_PI = 0.7978845608028654            # sqrt(2/pi)
_COEF = 0.044715 * _SQRT_2_OVER_PI              # folded: 0.044715 * sqrt(2/pi)

# Candidate lane-dense widths (all multiples of 128), largest first.
_LANE_CANDIDATES = (8192, 4096, 2048, 1024, 512, 384, 256, 128)
_MAX_RAGGED_COLS = 16384


def _gelu_kernel(x_ref, o_ref, *, compute_dtype):
    x = x_ref[...].astype(compute_dtype)
    # sqrt(2/pi) * (x + 0.044715 x^3) == x * (A + B * x * x)
    inner = x * (_SQRT_2_OVER_PI + _COEF * (x * x))
    h = 0.5 * x
    o_ref[...] = (h + h * jnp.tanh(inner)).astype(o_ref.dtype)   # tanh -> EUP


def _tpu_generation():
    """Best-effort TPU generation (4/5/6/7); 0 if unknown."""
    try:
        kind = jax.devices()[0].device_kind.lower()
    except Exception:
        return 0
    for gen, keys in ((7, ("v7", "tpu7", "7x")),
                      (6, ("v6", "tpu6")),
                      (5, ("v5", "tpu5")),
                      (4, ("v4", "tpu4"))):
        if any(k in kind for k in keys):
            return gen
    return 0


def _vmem_capacity_bytes(gen):
    """Physical VMEM per TensorCore (runtime query, else generation table)."""
    try:
        return int(pltpu.get_tpu_info().vmem_capacity_bytes)
    except Exception:
        pass
    # v5e/v6e: 128 MiB per TC; v7x: 64 MiB per TC; unknown -> conservative.
    return (128 if gen in (5, 6) else 64) * 2**20


def _default_tile_bytes(gen):
    if gen in (4, 5, 6):
        return 8 * 2**20            # plenty of VMEM, slower HBM -> big tiles
    if gen == 7:
        return 6 * 2**20            # 3.2 TB/s HBM, 64 MiB VMEM
    return 4 * 2**20                # unknown chip: safe everywhere


def _gelu_2d(x2d, *, target_tile_bytes, compute_dtype, vmem_cap):
    """Run the elementwise kernel over a lane-dense 2D slab."""
    rows, cols = x2d.shape
    dtype = x2d.dtype
    dtype_bytes = jnp.dtype(dtype).itemsize
    # Sublane multiple for the second-to-last block dim (covers packed dtypes).
    sub = {4: 8, 2: 16, 1: 32}.get(dtype_bytes, 8)

    # ~target_tile_bytes of input per grid step, rounded to the sublane mult.
    block_rows = max(sub, (target_tile_bytes // (cols * dtype_bytes)) // sub * sub)
    if block_rows >= rows:
        if rows > 2 * sub:
            # Never collapse to a single block when avoidable: >=2 grid steps
            # keep the DMA pipeline overlapped and let v7x's two TensorCores
            # split the "parallel" axis.
            half = (rows + 1) // 2
            block_rows = ((half + sub - 1) // sub) * sub
        else:
            block_rows = rows                   # full dim => always legal

    grid = (pl.cdiv(rows, block_rows),)         # ragged last block is fine

    # Double-buffered in + out buffers live at once (~4x tile), plus headroom;
    # cap at 3/4 of physical VMEM (96 MiB on v5e/v6e, 48 MiB on v7x).
    tile_bytes = block_rows * cols * dtype_bytes
    vmem_limit = int(min(vmem_cap * 3 // 4, max(16 * 2**20, 6 * tile_bytes)))

    kernel = functools.partial(_gelu_kernel, compute_dtype=compute_dtype)
    return pl.pallas_call(
        kernel,
        out_shape=jax.ShapeDtypeStruct((rows, cols), dtype),
        grid_spec=pltpu.PrefetchScalarGridSpec(
            num_scalar_prefetch=0,
            grid=grid,
            in_specs=[pl.BlockSpec((block_rows, cols), lambda i: (i, 0))],
            out_specs=pl.BlockSpec((block_rows, cols), lambda i: (i, 0)),
        ),
        compiler_params=pltpu.CompilerParams(
            dimension_semantics=("parallel",),   # shards grid across v7x's 2 TCs
            vmem_limit_bytes=vmem_limit,
        ),
    )(x2d)


def gelu(x, *, target_tile_bytes=None):
    """Elementwise tanh-approximation GELU (matches the reference module)."""
    orig_shape = x.shape
    n = x.size
    if n == 0:
        return x
    dtype_bytes = jnp.dtype(x.dtype).itemsize

    gen = _tpu_generation()
    if target_tile_bytes is None:
        target_tile_bytes = _default_tile_bytes(gen)
    vmem_cap = _vmem_capacity_bytes(gen)

    # bf16 math is native on v6e/v7x VPU+EUP (keeps the kernel memory-bound);
    # v5e has no bf16 VALU/EUP, so upcast there (and for all other dtypes).
    if x.dtype == jnp.bfloat16 and gen >= 6:
        compute_dtype = jnp.bfloat16
    else:
        compute_dtype = jnp.float32

    # Preferred: a lane-dense width (multiple of 128) dividing n exactly, so
    # no host-side pad/slice and fully unmasked vector stores.
    cols = None
    for c in _LANE_CANDIDATES:
        if n % c == 0:
            cols = c
            break

    if cols is None:
        # Ragged path: use the largest divisor of n as the (full-extent, hence
        # legal) lane dimension -- still a single HBM pass, no pad/slice.
        c = min(n, _MAX_RAGGED_COLS)
        best = 1
        while c >= 2:
            if n % c == 0:
                best = c
                break
            c -= 1
        if best >= 128 or n * dtype_bytes <= 8 * 2**20:
            cols = best if best >= 128 else n   # small tensor: one (1, n) block
        else:
            # TODO(synk): huge tensor whose size has no divisor in [128, 16K]
            # (e.g. a large prime) -- fall back to a minimal 1D pad + slice.
            pad = (-n) % 128
            flat = jnp.pad(x.reshape(-1), (0, pad))
            out = _gelu_2d(flat.reshape(-1, 128),
                           target_tile_bytes=target_tile_bytes,
                           compute_dtype=compute_dtype, vmem_cap=vmem_cap)
            return out.reshape(-1)[:n].reshape(orig_shape)

    x2d = x.reshape(n // cols, cols)
    out = _gelu_2d(x2d, target_tile_bytes=target_tile_bytes,
                   compute_dtype=compute_dtype, vmem_cap=vmem_cap)
    return out.reshape(orig_shape)


def gelu_ref(x):
    xf = x.astype(jnp.float32)
    return (0.5 * xf * (1.0 + jnp.tanh(
        jnp.sqrt(2.0 / jnp.pi) * (xf + 0.044715 * jnp.power(xf, 3))
    ))).astype(x.dtype)


if __name__ == "__main__":
    key = jax.random.PRNGKey(0)

    # Primary test: batch=2, seq=8, hidden=32 (GELU is elementwise).
    x = jax.random.normal(key, (2, 8, 32), dtype=jnp.float32)
    y = jax.block_until_ready(gelu(x))
    y_ref = gelu_ref(x)
    assert y.shape == x.shape and y.dtype == x.dtype
    assert jnp.allclose(y, y_ref, atol=1e-5, rtol=1e-5)

    # Lane-dense multi-block path (grid >= 2, exercises pipelining / TC split).
    k1, k2, k3 = jax.random.split(key, 3)
    x2 = jax.random.normal(k1, (4, 128, 1024), dtype=jnp.float32)
    assert jnp.allclose(jax.block_until_ready(gelu(x2)), gelu_ref(x2),
                        atol=1e-5, rtol=1e-5)

    # Ragged path (element count not a multiple of 128) -- no pad/slice.
    x3 = jax.random.normal(k2, (2, 8, 100), dtype=jnp.float32)
    assert jnp.allclose(jax.block_until_ready(gelu(x3)), gelu_ref(x3),
                        atol=1e-5, rtol=1e-5)

    # bf16 path (native bf16 math on v6e/v7x; f32 math elsewhere).
    x4 = jax.random.normal(k3, (4, 64, 256), dtype=jnp.bfloat16)
    y4 = jax.block_until_ready(gelu(x4))
    assert y4.shape == x4.shape and y4.dtype == x4.dtype
    assert jnp.allclose(y4.astype(jnp.float32),
                        gelu_ref(x4).astype(jnp.float32),
                        atol=5e-2, rtol=5e-2)

    print("KERNEL_OK")
</pallas_src>

<mosaic_0001>
module attributes {stable_mosaic.version = 11 : i64} {
  func.func @_gelu_kernel(%arg0: i32, %arg1: memref<1x512xf32, #tpu.memory_space<vmem>>, %arg2: memref<1x512xf32, #tpu.memory_space<vmem>>) attributes {dimension_semantics = [#tpu.dimension_semantics<parallel>], iteration_bounds = array<i64: 1>, scalar_prefetch = 0 : i64, scratch_operands = 0 : i64, tpu.core_type = #tpu.core_type<tc>, window_params = [{transform_indices = @transform_0, window_bounds = array<i64: 1, 512>}, {transform_indices = @transform_1, window_bounds = array<i64: 1, 512>}]} {
    %c0 = arith.constant 0 : index
    %c0_0 = arith.constant 0 : index
    %0 = vector.load %arg1[%c0, %c0_0] : memref<1x512xf32, #tpu.memory_space<vmem>>, vector<1x512xf32>
    %1 = arith.mulf %0, %0 : vector<1x512xf32>
    %cst = arith.constant 0.0356774069 : f32
    %2 = vector.broadcast %cst : f32 to vector<1x512xf32>
    %3 = arith.mulf %2, %1 : vector<1x512xf32>
    %cst_1 = arith.constant 0.797884583 : f32
    %4 = vector.broadcast %cst_1 : f32 to vector<1x512xf32>
    %5 = arith.addf %4, %3 : vector<1x512xf32>
    %6 = arith.mulf %0, %5 : vector<1x512xf32>
    %cst_2 = arith.constant 5.000000e-01 : f32
    %7 = vector.broadcast %cst_2 : f32 to vector<1x512xf32>
    %8 = arith.mulf %7, %0 : vector<1x512xf32>
    %9 = math.tanh %6 : vector<1x512xf32>
    %10 = arith.mulf %8, %9 : vector<1x512xf32>
    %11 = arith.addf %8, %10 : vector<1x512xf32>
    %c0_3 = arith.constant 0 : index
    %c0_4 = arith.constant 0 : index
    %12 = vector.load %arg2[%c0_3, %c0_4] : memref<1x512xf32, #tpu.memory_space<vmem>>, vector<1x512xf32>
    tpu.vector_store %arg2[%c0_3, %c0_4], %11 {strides = array<i32>} : memref<1x512xf32, #tpu.memory_space<vmem>>, vector<1x512xf32>,
    return
  }
  func.func @transform_0(%arg0: i32) -> (i32, i32) {
    %c0_i32 = arith.constant 0 : i32
    %c0_i32_0 = arith.constant 0 : i32
    return %arg0, %c0_i32 : i32, i32
  }
  func.func @transform_1(%arg0: i32) -> (i32, i32) {
    %c0_i32 = arith.constant 0 : i32
    %c0_i32_0 = arith.constant 0 : i32
    return %arg0, %c0_i32 : i32, i32
  }
}

</mosaic_0001>

<bundles_post_ra>
// kernel: tpu_custom_call.1
= control target key start
LH: loop header
LB: loop body
LE: loop exit
PB: predicated region body
PF: predicated region fallthrough
CT: control target
= control target key end

     0   :  { %6 = vsyncpa [#allocation3], 0  ;;  %s138_s0 = inlined_call_operand.hbm [shape: f32[1,512], index: 0, kind: input, shape index: {}]   ;;  %s139_s1 = inlined_call_operand.hbm [shape: f32[1,512], index: 1, kind: output, shape index: {}]  }
   0x1   :  { %7 = vsyncpa [#allocation4], 0  ;;  %s102_s6 = smov [#allocation2]   ;;  %s54_s10 = scalar_lea.hbm %s138_s0, 64 }
   0x2   :  { %s14_s7 = sshll.u32 %s102_s6, 4  ;;  %p55_p0 = scmp.ne.s32.totalorder %s138_s0, %s54_s10  ;;  %s15_s7 = int_to_ptr.vmem [resolvable:$true] %s14_s7 }
   0x3   :  { %p58_p1 = scmp.lt.u32.totalorder %s54_s10, %s138_s0 }
   0x5   :  { %p60_p2 = pnand %p58_p1, %p55_p0 }
   0x7   :  { %63 = shalt.err (!%p60_p2)
}
   0x8   :  { %s64_s15 = scalar_lea.vmem %s15_s7, 64  ;;  %p69_p4 = scmp.lt.s32.totalorder %s15_s7, %s15_s7 }
   0x9   :  { %p65_p3 = scmp.ne.s32.totalorder %s15_s7, %s64_s15  ;;  %p70_p5 = scmp.lt.s32.totalorder %s64_s15, %s64_s15 }
   0xb   :  { %p71_p6 = por %p70_p5, %p69_p4 }
   0xd   :  { %p72_p7 = pnand %p71_p6, %p65_p3 }
   0xf   :  { %75 = shalt.err (!%p72_p7)
}
  0x10   :  { %17 = dma.hbm_to_vmem [thread:$0]  %s138_s0, 64, %s15_s7, [#allocation3]  }
  0x11   :  { %98 = dma.done.wait [#allocation3], 64  }
  0x12   :  { %99 = vsyncadd [#allocation3], 4294967232  ;;  %v21_v0 = vld [vmem:[#allocation2] sm:$0xf]  ;;  %v30_v6 = vlaneseq  ;;  %s103_s18 = smov [#allocation5]  }
  0x13   :  { %v22_v1 = vmul.f32 %v21_v0, %v21_v0  ;;  %v26_v5 = vmul.f32 0.5, %v21_v0  ;;  %s41_s19 = sshll.u32 %s103_s18, 4  ;;  %s42_s19 = int_to_ptr.vmem [resolvable:$true] %s41_s19 }
  0x14   :  { %vm32_vm0 = vcmp.lt.s32.totalorder %v30_v6, 512  ;;  %s76_s20 = scalar_lea.vmem %s42_s19, 64  ;;  %p81_p9 = scmp.lt.s32.totalorder %s42_s19, %s42_s19 }
  0x15   :  { %v23_v2 = vmul.f32 0.035677407, %v22_v1  ;;  %p77_p8 = scmp.ne.s32.totalorder %s42_s19, %s76_s20  ;;  %p82_p10 = scmp.lt.s32.totalorder %s76_s20, %s76_s20 }
  0x17   :  { %v24_v3 = vadd.f32 0.7978846, %v23_v2  ;;  %p83_p11 = por %p82_p10, %p81_p9 }
  0x19   :  { %v25_v4 = vmul.f32 %v24_v3, %v21_v0  ;;  %p84_p12 = pnand %p83_p11, %p77_p8 }
  0x1b   :  { %52 = vtanh.f32 %v25_v4 }
  0x25   :  { %v53_v7 = vpop.eup %52 }
  0x26   :  { %v28_v8 = vmul.f32 %v53_v7, %v26_v5 }
  0x28   :  { %v29_v9 = vadd.f32 %v28_v8, %v26_v5 }
  0x2a   :  { %34 = vst.msk [vmem:[#allocation5] sm:$0xf] %vm32_vm0, %v29_v9 }
  0x2b   :  { %87 = shalt.err (!%p84_p12)
}
  0x2c   :  { %s88_s22 = scalar_lea.hbm %s139_s1, 64 }
  0x2d   :  { %p89_p13 = scmp.ne.s32.totalorder %s139_s1, %s88_s22  ;;  %p92_p0 = scmp.lt.u32.totalorder %s88_s22, %s139_s1 }
  0x2f   :  { %p94_p1 = pnand %p92_p0, %p89_p13 }
  0x31   :  { %97 = shalt.err (!%p94_p1)
}
  0x32   :  { %44 = dma.vmem_to_hbm [thread:$0]  %s42_s19, 64, %s139_s1, [#allocation4]  }
  0x33   :  { %100 = dma.done.wait [#allocation4], 64  }
  0x34   :  { %101 = vsyncadd [#allocation4], 4294967232 }
  0x35   :  { %48 = vsyncpa [#allocation3], 1 }
  0x36   :  { %49 = vsyncpa [#allocation4], 1 }

</bundles_post_ra>
